<compile_context>
chip_gen: v7x
topology: tpu7x:2x2x1
jax: 0.10.0
libtpu: 0.0.40
codegen_flags: <defaults>
</compile_context>

<pallas_src>
import jax
import jax.numpy as jnp
from jax.experimental import pallas as pl
from jax.experimental.pallas import tpu as pltpu

DIM_FROM = 3
DIM_TO = 2


def _linear_kernel(xt_ref, w_ref, b_ref, ot_ref):
    # xt_ref: (DIM_FROM, TILE_N)  -- batch on the lane axis
    # w_ref : (DIM_TO, DIM_FROM)  -- PyTorch nn.Linear weight layout
    # b_ref : (DIM_TO, 1)
    # ot_ref: (DIM_TO, TILE_N)
    x = xt_ref[...]
    w = w_ref[...]
    dim_from = xt_ref.shape[0]

    # out[j, n] = b[j] + sum_k w[j, k] * x[k, n]
    # Pure VPU broadcast-FMAs (DIM_FROM = 3 terms); keeps the MXU out of the
    # critical path of this memory-bound kernel and the output lane-dense.
    out = b_ref[...] + w[:, 0:1] * x[0:1, :]
    for k in range(1, dim_from):
        out = out + w[:, k : k + 1] * x[k : k + 1, :]

    ot_ref[...] = out.astype(ot_ref.dtype)


def linear1(x, w, b, *, tile_n=8192):
    """Forward pass of Linear1.

    x: (N, DIM_FROM) f32
    w: (DIM_TO, DIM_FROM) f32   (PyTorch nn.Linear weight layout)
    b: (DIM_TO,) f32
    returns (N, DIM_TO) f32
    """
    n, dim_from = x.shape
    dim_to, wk = w.shape
    assert wk == dim_from

    # Lane-dense layout: put the batch axis last (wrapper-side layout plumbing).
    xt = x.T                      # (dim_from, n)
    b2 = b.reshape(dim_to, 1)     # (dim_to, 1)

    # Tile selection: one big grid step for small batches; otherwise the
    # largest 128-aligned divisor of n up to tile_n (keeps the (8,128) block
    # constraint satisfied and amortizes per-step pipeline overhead).
    if n <= tile_n:
        tile_n = n
    elif n % tile_n != 0:
        tile_n = next((t for t in range(tile_n, 0, -128) if n % t == 0), n)
    grid = (n // tile_n,)

    out_t = pl.pallas_call(
        _linear_kernel,
        out_shape=jax.ShapeDtypeStruct((dim_to, n), x.dtype),
        grid_spec=pltpu.PrefetchScalarGridSpec(
            num_scalar_prefetch=0,
            grid=grid,
            in_specs=[
                pl.BlockSpec((dim_from, tile_n), lambda i: (0, i)),
                pl.BlockSpec((dim_to, dim_from), lambda i: (0, 0)),
                pl.BlockSpec((dim_to, 1), lambda i: (0, 0)),
            ],
            out_specs=pl.BlockSpec((dim_to, tile_n), lambda i: (0, i)),
        ),
        compiler_params=pltpu.CompilerParams(
            # Batch axis is embarrassingly parallel -> megacore sharding on v7x.
            dimension_semantics=("parallel",),
        ),
    )(xt, w, b2)

    return out_t.T                # back to (N, DIM_TO)


def _init_params(key):
    """Deterministic init mimicking PyTorch nn.Linear default U[-1/sqrt(fan_in), +]."""
    kw, kb = jax.random.split(key)
    bound = DIM_FROM ** -0.5
    w = jax.random.uniform(kw, (DIM_TO, DIM_FROM), jnp.float32, -bound, bound)
    b = jax.random.uniform(kb, (DIM_TO,), jnp.float32, -bound, bound)
    return w, b


def _reference(x, w, b):
    return x @ w.T + b


if __name__ == "__main__":
    key = jax.random.PRNGKey(0)
    kx, kp = jax.random.split(key)

    N = 16  # small demo batch; kernel handles large N with 8192-row tiles
    x = jax.random.normal(kx, (N, DIM_FROM), dtype=jnp.float32)
    w, b = _init_params(kp)

    out = linear1(x, w, b)
    out = jax.block_until_ready(out)

    ref = _reference(x, w, b)
    assert out.shape == (N, DIM_TO)
    assert jnp.allclose(out, ref, atol=1e-5, rtol=1e-5), "mismatch vs reference"

    print("KERNEL_OK")
</pallas_src>

<mosaic_0001>
module attributes {stable_mosaic.version = 11 : i64} {
  func.func @_linear_kernel(%arg0: i32, %arg1: memref<3x16xf32, #tpu.memory_space<vmem>>, %arg2: memref<2x3xf32, #tpu.memory_space<vmem>>, %arg3: memref<2x1xf32, #tpu.memory_space<vmem>>, %arg4: memref<2x16xf32, #tpu.memory_space<vmem>>) attributes {dimension_semantics = [#tpu.dimension_semantics<parallel>], iteration_bounds = array<i64: 1>, scalar_prefetch = 0 : i64, scratch_operands = 0 : i64, tpu.core_type = #tpu.core_type<tc>, window_params = [{transform_indices = @transform_0, window_bounds = array<i64: 3, 16>}, {pipeline_mode = #tpu.pipeline_mode<synchronous>, transform_indices = @transform_1, window_bounds = array<i64: 2, 3>}, {pipeline_mode = #tpu.pipeline_mode<synchronous>, transform_indices = @transform_2, window_bounds = array<i64: 2, 1>}, {transform_indices = @transform_3, window_bounds = array<i64: 2, 16>}]} {
    %c0 = arith.constant 0 : index
    %c0_0 = arith.constant 0 : index
    %0 = vector.load %arg1[%c0, %c0_0] : memref<3x16xf32, #tpu.memory_space<vmem>>, vector<3x16xf32>
    %c0_1 = arith.constant 0 : index
    %c0_2 = arith.constant 0 : index
    %1 = vector.load %arg2[%c0_1, %c0_2] : memref<2x3xf32, #tpu.memory_space<vmem>>, vector<2x3xf32>
    %c0_3 = arith.constant 0 : index
    %c0_4 = arith.constant 0 : index
    %2 = vector.load %arg3[%c0_3, %c0_4] : memref<2x1xf32, #tpu.memory_space<vmem>>, vector<2x1xf32>
    %3 = vector.extract_strided_slice %1 {offsets = [0, 0], sizes = [2, 1], strides = [1, 1]} : vector<2x3xf32> to vector<2x1xf32>
    %4 = vector.extract_strided_slice %0 {offsets = [0, 0], sizes = [1, 16], strides = [1, 1]} : vector<3x16xf32> to vector<1x16xf32>
    %5 = vector.broadcast %3 : vector<2x1xf32> to vector<2x16xf32>
    %6 = vector.broadcast %4 : vector<1x16xf32> to vector<2x16xf32>
    %7 = arith.mulf %5, %6 : vector<2x16xf32>
    %8 = vector.broadcast %2 : vector<2x1xf32> to vector<2x16xf32>
    %9 = arith.addf %8, %7 : vector<2x16xf32>
    %10 = vector.extract_strided_slice %1 {offsets = [0, 1], sizes = [2, 1], strides = [1, 1]} : vector<2x3xf32> to vector<2x1xf32>
    %11 = vector.extract_strided_slice %0 {offsets = [1, 0], sizes = [1, 16], strides = [1, 1]} : vector<3x16xf32> to vector<1x16xf32>
    %12 = vector.broadcast %10 : vector<2x1xf32> to vector<2x16xf32>
    %13 = vector.broadcast %11 : vector<1x16xf32> to vector<2x16xf32>
    %14 = arith.mulf %12, %13 : vector<2x16xf32>
    %15 = arith.addf %9, %14 : vector<2x16xf32>
    %16 = vector.extract_strided_slice %1 {offsets = [0, 2], sizes = [2, 1], strides = [1, 1]} : vector<2x3xf32> to vector<2x1xf32>
    %17 = vector.extract_strided_slice %0 {offsets = [2, 0], sizes = [1, 16], strides = [1, 1]} : vector<3x16xf32> to vector<1x16xf32>
    %18 = vector.broadcast %16 : vector<2x1xf32> to vector<2x16xf32>
    %19 = vector.broadcast %17 : vector<1x16xf32> to vector<2x16xf32>
    %20 = arith.mulf %18, %19 : vector<2x16xf32>
    %21 = arith.addf %15, %20 : vector<2x16xf32>
    %c0_5 = arith.constant 0 : index
    %c0_6 = arith.constant 0 : index
    %22 = vector.load %arg4[%c0_5, %c0_6] : memref<2x16xf32, #tpu.memory_space<vmem>>, vector<2x16xf32>
    tpu.vector_store %arg4[%c0_5, %c0_6], %21 {strides = array<i32>} : memref<2x16xf32, #tpu.memory_space<vmem>>, vector<2x16xf32>,
    return
  }
  func.func @transform_0(%arg0: i32) -> (i32, i32) {
    %c0_i32 = arith.constant 0 : i32
    %c0_i32_0 = arith.constant 0 : i32
    return %c0_i32, %arg0 : i32, i32
  }
  func.func @transform_1(%arg0: i32) -> (i32, i32) {
    %c0_i32 = arith.constant 0 : i32
    %c0_i32_0 = arith.constant 0 : i32
    %c0_i32_1 = arith.constant 0 : i32
    return %c0_i32, %c0_i32_0 : i32, i32
  }
  func.func @transform_2(%arg0: i32) -> (i32, i32) {
    %c0_i32 = arith.constant 0 : i32
    %c0_i32_0 = arith.constant 0 : i32
    %c0_i32_1 = arith.constant 0 : i32
    return %c0_i32, %c0_i32_0 : i32, i32
  }
  func.func @transform_3(%arg0: i32) -> (i32, i32) {
    %c0_i32 = arith.constant 0 : i32
    %c0_i32_0 = arith.constant 0 : i32
    return %c0_i32, %arg0 : i32, i32
  }
}

</mosaic_0001>

<bundles_post_ra>
// kernel: tpu_custom_call.1
= control target key start
LH: loop header
LB: loop body
LE: loop exit
PB: predicated region body
PF: predicated region fallthrough
CT: control target
= control target key end

     0   :  { %8 = vsyncpa [#allocation3], 0  ;;  %s195_s0 = inlined_call_operand.hbm [shape: f32[3,16], index: 0, kind: input, shape index: {}]   ;;  %s196_s1 = inlined_call_operand.vmem [shape: f32[2,3], index: 1, kind: input, shape index: {}]   ;;  %s197_s2 = inlined_call_operand.vmem [shape: f32[2,1], index: 2, kind: input, shape index: {}]   ;;  %s198_s3 = inlined_call_operand.hbm [shape: f32[2,16], index: 3, kind: output, shape index: {}]  }
   0x1   :  { %9 = vsyncpa [#allocation4], 0  ;;  %s140_s12 = smov [#allocation2]   ;;  %s92_s16 = scalar_lea.hbm %s195_s0, 64 }
   0x2   :  { %s16_s13 = sshll.u32 %s140_s12, 4  ;;  %p93_p0 = scmp.ne.s32.totalorder %s195_s0, %s92_s16  ;;  %s17_s13 = int_to_ptr.vmem [resolvable:$true] %s16_s13 }
   0x3   :  { %p96_p1 = scmp.lt.u32.totalorder %s92_s16, %s195_s0 }
   0x5   :  { %p98_p2 = pnand %p96_p1, %p93_p0 }
   0x7   :  { %101 = shalt.err (!%p98_p2)
}
   0x8   :  { %s102_s21 = scalar_lea.vmem %s17_s13, 64  ;;  %p107_p4 = scmp.lt.s32.totalorder %s17_s13, %s17_s13 }
   0x9   :  { %p103_p3 = scmp.ne.s32.totalorder %s17_s13, %s102_s21  ;;  %p108_p5 = scmp.lt.s32.totalorder %s102_s21, %s102_s21 }
   0xb   :  { %p109_p6 = por %p108_p5, %p107_p4 }
   0xd   :  { %p110_p7 = pnand %p109_p6, %p103_p3 }
   0xf   :  { %113 = shalt.err (!%p110_p7)
}
  0x10   :  { %19 = dma.hbm_to_vmem [thread:$0]  %s195_s0, 64, %s17_s13, [#allocation3]  }
  0x11   :  { %136 = dma.done.wait [#allocation3], 64  }
  0x12   :  { %137 = vsyncadd [#allocation3], 4294967232  ;;  %v141_v0 = vmov 0   ;;  %v142_v1 = vmov 1   ;;  %v28_v2 = vld [vmem:[%s196_s1] sm:$0x3]  ;;  %v35_v5 = vlaneseq }
  0x13   :  { %88 = vset.pattern.permute.xlu0 %v141_v0  ;;  %89 = vset.pattern.permute.xlu1 %v142_v1  ;;  %v29_v3 = vld [vmem:[%s197_s2] sm:$0x3]  ;;  %v143_v4 = vmov 2   ;;  %s144_s0 = smov [#allocation5]   ;;  %vm66_vm0 = vcmask 123904  }
  0x14   :  { %32 = vperm.xlu0 %88, %v28_v2   ;;  %47 = vperm.xlu1 %89, %v28_v2   ;;  %v36_v6 = vshrl.u32 %v35_v5, 7  ;;  %v27_v8 = vld [vmem:[#allocation2] sm:$0x7]  ;;  %s74_s1 = sshll.u32 %s144_s0, 4  ;;  %s75_s1 = int_to_ptr.vmem [resolvable:$true] %s74_s1 }
  0x15   :  { %s114_s2 = scalar_lea.vmem %s75_s1, 32  ;;  %p119_p9 = scmp.lt.s32.totalorder %s75_s1, %s75_s1 }
  0x16   :  { %v37_v7 = vsub.s32 0, %v36_v6  ;;  %v52_v9 = vsub.s32 1, %v36_v6  ;;  %v62_v10 = vsub.s32 2, %v36_v6  ;;  %p115_p8 = scmp.ne.s32.totalorder %s75_s1, %s114_s2  ;;  %p120_p10 = scmp.lt.s32.totalorder %s114_s2, %s114_s2 }
  0x18   :  { %42 = vperm.xlu0 %88, %v29_v3   ;;  %90 = vset.pattern.permute.xlu1 %v143_v4  ;;  %v38_v11 = vrot.slane %v27_v8, %v37_v7  ;;  %v53_v14 = vrot.slane %v27_v8, %v52_v9  ;;  %v63_v15 = vrot.slane %v27_v8, %v62_v10  ;;  %p121_p11 = por %p120_p10, %p119_p9 }
  0x19   :  { %57 = vperm.xlu1 %90, %v28_v2  }
  0x1a   :  { %p122_p12 = pnand %p121_p11, %p115_p8 }
  0x1c   :  { %91 = vset.pattern.permute.xlu0 %v143_v4 }
  0x93   :  { %v33_v12 = vpop.permute.xlu0 %32  ;;  %v48_v13 = vpop.permute.xlu1 %47 }
  0x94   :  { %v39_v16 = vmul.f32 %v38_v11, %v33_v12  ;;  %v54_v18 = vmul.f32 %v53_v14, %v48_v13 }
  0x97   :  { %v43_v17 = vpop.permute.xlu0 %42 }
  0x98   :  { %v45_v19 = vadd.f32 %v43_v17, %v39_v16  ;;  %v58_v20 = vpop.permute.xlu1 %57 }
  0x99   :  { %v64_v21 = vmul.f32 %v63_v15, %v58_v20 }
  0x9a   :  { %v55_v22 = vadd.f32 %v54_v18, %v45_v19 }
  0x9c   :  { %v65_v23 = vadd.f32 %v64_v21, %v55_v22 }
  0x9e   :  { %67 = vst.msk [vmem:[#allocation5] sm:$0x3] %vm66_vm0, %v65_v23 }
  0x9f   :  { %125 = shalt.err (!%p122_p12)
}
  0xa0   :  { %s126_s30 = scalar_lea.hbm %s198_s3, 32 }
  0xa1   :  { %p127_p13 = scmp.ne.s32.totalorder %s198_s3, %s126_s30  ;;  %p130_p0 = scmp.lt.u32.totalorder %s126_s30, %s198_s3 }
  0xa3   :  { %p132_p1 = pnand %p130_p0, %p127_p13 }
  0xa5   :  { %135 = shalt.err (!%p132_p1)
}
  0xa6   :  { %77 = dma.vmem_to_hbm [thread:$0]  %s75_s1, 32, %s198_s3, [#allocation4]  }
  0xa7   :  { %138 = dma.done.wait [#allocation4], 32  }
  0xa8   :  { %139 = vsyncadd [#allocation4], 4294967264 }
  0xa9   :  { %81 = vsyncpa [#allocation3], 1 }
  0xaa   :  { %82 = vsyncpa [#allocation4], 1 }

</bundles_post_ra>
